<compile_context>
chip_gen: v5e
topology: v5e:2x2
jax: 0.10.0
libtpu: 0.0.40
codegen_flags: <defaults>
</compile_context>

<pallas_src>
import jax
import jax.numpy as jnp
from jax.experimental import pallas as pl
from jax.experimental.pallas import tpu as pltpu

_LANE = 128
_SUBLANE = 8


def _round_up(v, m):
    return (v + m - 1) // m * m


def _tpu_vmem_budgets():
    """Generation-aware (tile_budget_bytes, vmem_limit_cap_bytes)."""
    cap = None
    try:
        cap = int(pltpu.get_tpu_info().vmem_capacity_bytes)
    except Exception:
        cap = None
    if cap is None or cap <= 0:
        cap = 64 * 1024 * 1024  # conservative: assume v7x-class 64 MiB/TC
    if cap <= 80 * 1024 * 1024:
        # v7x: 64 MiB per TensorCore -> keep the streaming buffers <= ~16 MiB
        # and the scoped limit well under the physical capacity.
        return 16 * 1024 * 1024, 44 * 1024 * 1024
    # v5e / v6e: 128 MiB physical VMEM.
    return 32 * 1024 * 1024, 96 * 1024 * 1024


def _choose_rows(n_rows, requested, cap_rows):
    """Pick a row-tile size: multiple of 8 under cap, or the full extent."""
    tile = cap_rows if requested is None else min(_round_up(requested, _SUBLANE), cap_rows)
    tile = max(_SUBLANE, (tile // _SUBLANE) * _SUBLANE)
    if n_rows <= tile:
        return n_rows  # single block equal to the full dim (always legal)
    return tile        # multiple of 8; last block is a partial block


# ----------------------------------------------------------------------------
# Small-D lane-dense path (D < 128, 128 % D == 0): one MXU matmul per tile.
# x packed to (R, 128) holds k = 128/D original rows per packed row; the
# selector S[l, j] = w[l % D] * (l // D == j) reduces each D-chunk to its row.
# ----------------------------------------------------------------------------
def _packed_kernel(x_ref, s_ref, b_ref, o_ref):
    out = jnp.dot(x_ref[...], s_ref[...], preferred_element_type=jnp.float32)
    o_ref[...] = jax.nn.sigmoid(out + b_ref[0, 0]).astype(o_ref.dtype)


def _build_selector(weight, d, k):
    lane = jnp.arange(_LANE)
    w_flat = jnp.asarray(weight).reshape(-1)              # (d,)
    w_rep = w_flat[lane % d]                              # (128,)
    sel = (lane[:, None] // d) == jnp.arange(k)[None, :]  # (128, k) one-hot chunks
    return jnp.where(sel, w_rep[:, None], 0.0)


# ----------------------------------------------------------------------------
# Generic streamed-GEMV path.
# ----------------------------------------------------------------------------
def _make_generic_kernel(d, tile_d, grid_d):
    mask_last = (grid_d > 1) and (d % tile_d != 0)

    def kernel(x_ref, w_ref, b_ref, o_ref, *scratch):
        x = x_ref[...]                      # (tile_n, tile_d) in input dtype
        w = w_ref[...]                      # (1, tile_d)     in input dtype
        if mask_last:
            k = pl.program_id(1)
            col = jax.lax.broadcasted_iota(jnp.int32, x.shape, 1)
            valid = (k * tile_d + col) < d
            x = jnp.where(valid, x, jnp.zeros_like(x))
        # VPU multiply + XLU lane reduce; f32 accumulation without upcasting the
        # whole x tile (kernel is HBM-bandwidth bound, so this is off the
        # critical path).
        partial = jnp.sum(x * w, axis=-1, keepdims=True, dtype=jnp.float32)

        if grid_d == 1:
            o_ref[...] = jax.nn.sigmoid(partial + b_ref[0, 0]).astype(o_ref.dtype)
        else:
            acc_ref = scratch[0]
            k = pl.program_id(1)

            @pl.when(k == 0)
            def _():
                acc_ref[...] = jnp.zeros_like(acc_ref)

            acc_ref[...] += partial

            @pl.when(k == pl.num_programs(1) - 1)
            def _():
                o_ref[...] = jax.nn.sigmoid(acc_ref[...] + b_ref[0, 0]).astype(o_ref.dtype)

    return kernel


def predictor_forward(x, weight, bias, *, tile_rows=None, tile_d_max=2048):
    """sigmoid(x @ weight.T + bias).  x: [..., D], weight: [1, D], bias: scalar."""
    orig_shape = x.shape
    d = orig_shape[-1]
    x2 = x.reshape(-1, d)                      # free row-major collapse of leading dims
    n = x2.shape[0]
    weight = jnp.asarray(weight).reshape(1, d)
    out_dtype = x.dtype
    b_arr = jnp.asarray(bias, dtype=jnp.float32).reshape(1, 1)

    x_item = jnp.dtype(x.dtype).itemsize
    out_item = jnp.dtype(out_dtype).itemsize
    tile_budget, limit_cap = _tpu_vmem_budgets()

    use_packed = (d < _LANE) and (_LANE % d == 0) and n > 0 and (n % (_LANE // d) == 0)

    if use_packed:
        # ---- lane-dense small-D path -------------------------------------
        k = _LANE // d
        r = n // k
        xp = x2.reshape(r, _LANE)                               # metadata reshape
        sel = _build_selector(weight, d, k).astype(x.dtype)     # (128, k), resident

        # Lane-padded per-row VMEM accounting: x double buffer + out double
        # buffer (out's k lanes pad to 128 in VMEM).
        per_row = 2 * _LANE * x_item + 2 * _LANE * out_item
        cap_rows = max(_SUBLANE, (tile_budget // per_row) // _SUBLANE * _SUBLANE)
        tile_r = _choose_rows(r, tile_rows, cap_rows)
        grid = (pl.cdiv(r, tile_r),)

        need = tile_r * per_row + 2 * _LANE * _LANE * x_item + (1 << 16)
        vmem_limit = int(min(limit_cap, max(need * 2, 32 * 1024 * 1024)))

        out = pl.pallas_call(
            _packed_kernel,
            out_shape=jax.ShapeDtypeStruct((r, k), out_dtype),
            grid_spec=pltpu.PrefetchScalarGridSpec(
                num_scalar_prefetch=0,
                grid=grid,
                in_specs=[
                    pl.BlockSpec((tile_r, _LANE), lambda i: (i, 0)),   # packed x tiles
                    pl.BlockSpec((_LANE, k), lambda i: (0, 0)),        # resident selector
                    pl.BlockSpec(memory_space=pltpu.SMEM),             # bias scalar
                ],
                out_specs=pl.BlockSpec((tile_r, k), lambda i: (i, 0)),
            ),
            compiler_params=pltpu.CompilerParams(
                dimension_semantics=("parallel",),
                vmem_limit_bytes=vmem_limit,
            ),
        )(xp, sel, b_arr)
        out = out.reshape(n, 1)
    else:
        # ---- generic streamed GEMV path ----------------------------------
        tile_d_cap = max(_LANE, _round_up(min(tile_d_max, 8192), _LANE))
        if d <= tile_d_cap:
            tile_d, grid_d = d, 1
        else:
            tile_d = tile_d_cap
            grid_d = pl.cdiv(d, tile_d)

        w_in = weight.astype(x.dtype)
        if grid_d > 1 and d % tile_d != 0:
            # Tiny (1, D) pad only -- never pad x itself.
            w_in = jnp.pad(w_in, ((0, 0), (0, grid_d * tile_d - d)))

        lane_d = _round_up(tile_d, _LANE)
        per_row = (2 * lane_d * x_item                         # x double buffer
                   + (128 * 4 if grid_d > 1 else 0)            # f32 acc (lane-padded)
                   + 2 * _LANE * out_item)                     # out blocks (lane-padded)
        cap_rows = max(_SUBLANE, (tile_budget // per_row) // _SUBLANE * _SUBLANE)
        tile_n = _choose_rows(n, tile_rows, cap_rows)
        grid_n = pl.cdiv(n, tile_n)

        kernel = _make_generic_kernel(d, tile_d, grid_d)
        scratch = [pltpu.VMEM((tile_n, 1), jnp.float32)] if grid_d > 1 else []

        w_bytes = 2 * _SUBLANE * lane_d * jnp.dtype(w_in.dtype).itemsize
        need = tile_n * per_row + w_bytes + (1 << 16)
        vmem_limit = int(min(limit_cap, max(need * 2, 32 * 1024 * 1024)))

        if grid_d == 1:
            grid = (grid_n,)
            in_specs = [
                pl.BlockSpec((tile_n, tile_d), lambda i: (i, 0)),
                pl.BlockSpec((1, tile_d), lambda i: (0, 0)),
                pl.BlockSpec(memory_space=pltpu.SMEM),
            ]
            out_specs = pl.BlockSpec((tile_n, 1), lambda i: (i, 0))
            dims = ("parallel",)
        else:
            grid = (grid_n, grid_d)
            in_specs = [
                pl.BlockSpec((tile_n, tile_d), lambda i, j: (i, j)),
                pl.BlockSpec((1, tile_d), lambda i, j: (0, j)),
                pl.BlockSpec(memory_space=pltpu.SMEM),
            ]
            out_specs = pl.BlockSpec((tile_n, 1), lambda i, j: (i, 0))
            dims = ("parallel", "arbitrary")

        out = pl.pallas_call(
            kernel,
            out_shape=jax.ShapeDtypeStruct((n, 1), out_dtype),
            grid_spec=pltpu.PrefetchScalarGridSpec(
                num_scalar_prefetch=0,
                grid=grid,
                in_specs=in_specs,
                out_specs=out_specs,
                scratch_shapes=scratch,
            ),
            compiler_params=pltpu.CompilerParams(
                dimension_semantics=dims,
                vmem_limit_bytes=vmem_limit,
            ),
        )(x2, w_in, b_arr)

    return out.reshape(orig_shape[:-1] + (1,))


class PredictorParams:
    """Deterministic parameter construction mirroring Predictor.__init__."""

    def __init__(self, embed_dim: int, pre_node: bool = False, key=None):
        dim = embed_dim * 2 if pre_node else embed_dim
        self.dim = dim
        # weight.data.uniform_(1/dim, 1/dim) -> constant 1/dim
        self.weight = jnp.full((1, dim), 1.0 / dim, dtype=jnp.float32)
        # PyTorch Linear default bias init: U(-1/sqrt(dim), 1/sqrt(dim)).
        if key is None:
            key = jax.random.PRNGKey(0)
        bound = 1.0 / (dim ** 0.5)
        self.bias = jax.random.uniform(key, (), minval=-bound, maxval=bound,
                                       dtype=jnp.float32)
        # TODO(synk): args.dropout1 is stored by the PyTorch module but never
        # used in forward(); intentionally omitted here.

    def __call__(self, x, **kwargs):
        return predictor_forward(x, self.weight, self.bias, **kwargs)


if __name__ == "__main__":
    key = jax.random.PRNGKey(0)
    k_x, k_b, k_x2, k_x3 = jax.random.split(key, 4)

    # Test 1: the module's real shape (embed_dim=32) -> lane-dense packed path.
    embed_dim, batch = 32, 8
    x = jax.random.normal(k_x, (batch, embed_dim), dtype=jnp.float32)
    predictor = PredictorParams(embed_dim, pre_node=False, key=k_b)
    out = jax.block_until_ready(predictor(x))
    ref = jax.nn.sigmoid(x @ predictor.weight.T + predictor.bias)
    assert out.shape == (batch, 1)
    assert jnp.allclose(out, ref, atol=1e-6, rtol=1e-6)

    # Test 2: pre_node=True (dim=64), leading batch dim, ragged last row tile
    # on the packed path (R=150 rows, tile_rows=64).
    embed_dim2 = 32
    x2 = jax.random.normal(k_x2, (3, 100, embed_dim2 * 2), dtype=jnp.float32)
    pred2 = PredictorParams(embed_dim2, pre_node=True, key=k_b)
    out2 = jax.block_until_ready(
        predictor_forward(x2, pred2.weight, pred2.bias, tile_rows=64))
    ref2 = jax.nn.sigmoid(x2 @ pred2.weight.T + pred2.bias)
    assert out2.shape == (3, 100, 1)
    assert jnp.allclose(out2, ref2, atol=1e-5, rtol=1e-5)

    # Test 3: generic path with multi-step D accumulation, ragged last D tile
    # (in-kernel lane mask) and ragged last N tile (partial block) -- no pads.
    n3, d3 = 300, 200
    x3 = jax.random.normal(k_x3, (n3, d3), dtype=jnp.float32)
    w3 = jax.random.normal(jax.random.PRNGKey(7), (1, d3), dtype=jnp.float32) * 0.05
    b3 = 0.1
    out3 = jax.block_until_ready(
        predictor_forward(x3, w3, b3, tile_rows=128, tile_d_max=128))
    ref3 = jax.nn.sigmoid(x3 @ w3.T + b3)
    assert out3.shape == (n3, 1)
    assert jnp.allclose(out3, ref3, atol=1e-5, rtol=1e-5)

    print("KERNEL_OK")
</pallas_src>

<mosaic_0001>
module attributes {stable_mosaic.version = 11 : i64} {
  func.func @_packed_kernel(%arg0: i32, %arg1: memref<2x128xf32, #tpu.memory_space<vmem>>, %arg2: memref<128x4xf32, #tpu.memory_space<vmem>>, %arg3: memref<1x1xf32, #tpu.memory_space<smem>>, %arg4: memref<2x4xf32, #tpu.memory_space<vmem>>) attributes {dimension_semantics = [#tpu.dimension_semantics<parallel>], iteration_bounds = array<i64: 1>, scalar_prefetch = 0 : i64, scratch_operands = 0 : i64, tpu.core_type = #tpu.core_type<tc>, window_params = [{transform_indices = @transform_0, window_bounds = array<i64: 2, 128>}, {pipeline_mode = #tpu.pipeline_mode<synchronous>, transform_indices = @transform_1, window_bounds = array<i64: 128, 4>}, {transform_indices = @transform_2, window_bounds = array<i64: 1, 1>}, {transform_indices = @transform_3, window_bounds = array<i64: 2, 4>}]} {
    %c0 = arith.constant 0 : index
    %c0_0 = arith.constant 0 : index
    %0 = vector.load %arg1[%c0, %c0_0] : memref<2x128xf32, #tpu.memory_space<vmem>>, vector<2x128xf32>
    %c0_1 = arith.constant 0 : index
    %c0_2 = arith.constant 0 : index
    %1 = vector.load %arg2[%c0_1, %c0_2] : memref<128x4xf32, #tpu.memory_space<vmem>>, vector<128x4xf32>
    %cst = arith.constant dense<0.000000e+00> : vector<2x4xf32>
    %2 = tpu.matmul %0, %1, %cst {dimension_numbers = #tpu.dot_dimension_numbers<[1], [0], [0], [1], [0, 0, 1, 1], [], []>} : vector<2x128xf32>, vector<128x4xf32>, vector<2x4xf32> -> vector<2x4xf32>
    %c0_3 = arith.constant 0 : index
    %c0_4 = arith.constant 0 : index
    %3 = memref.load %arg3[%c0_3, %c0_4] : memref<1x1xf32, #tpu.memory_space<smem>>
    %4 = vector.broadcast %3 : f32 to vector<2x4xf32>
    %5 = arith.addf %2, %4 : vector<2x4xf32>
    %6 = arith.negf %5 : vector<2x4xf32>
    %7 = math.exp %6 : vector<2x4xf32>
    %cst_5 = arith.constant 1.000000e+00 : f32
    %8 = vector.broadcast %cst_5 : f32 to vector<2x4xf32>
    %9 = arith.addf %8, %7 : vector<2x4xf32>
    %10 = arith.divf %8, %9 : vector<2x4xf32>
    %c0_6 = arith.constant 0 : index
    %c0_7 = arith.constant 0 : index
    %11 = vector.load %arg4[%c0_6, %c0_7] : memref<2x4xf32, #tpu.memory_space<vmem>>, vector<2x4xf32>
    tpu.vector_store %arg4[%c0_6, %c0_7], %10 {strides = array<i32>} : memref<2x4xf32, #tpu.memory_space<vmem>>, vector<2x4xf32>,
    return
  }
  func.func @transform_0(%arg0: i32) -> (i32, i32) {
    %c0_i32 = arith.constant 0 : i32
    %c0_i32_0 = arith.constant 0 : i32
    return %arg0, %c0_i32 : i32, i32
  }
  func.func @transform_1(%arg0: i32) -> (i32, i32) {
    %c0_i32 = arith.constant 0 : i32
    %c0_i32_0 = arith.constant 0 : i32
    %c0_i32_1 = arith.constant 0 : i32
    return %c0_i32, %c0_i32_0 : i32, i32
  }
  func.func @transform_2(%arg0: i32) -> (i32, i32) {
    %c0_i32 = arith.constant 0 : i32
    %c0_i32_0 = arith.constant 0 : i32
    %c0_i32_1 = arith.constant 0 : i32
    return %c0_i32, %c0_i32_0 : i32, i32
  }
  func.func @transform_3(%arg0: i32) -> (i32, i32) {
    %c0_i32 = arith.constant 0 : i32
    %c0_i32_0 = arith.constant 0 : i32
    return %arg0, %c0_i32 : i32, i32
  }
}

</mosaic_0001>

<bundles_post_ra>
// kernel: tpu_custom_call.1
= control target key start
LH: loop header
LB: loop body
LE: loop exit
PB: predicated region body
PF: predicated region fallthrough
CT: control target
= control target key end

     0   :  { %s202_s0 = inlined_call_operand.vmem [shape: f32[2,128], index: 0, kind: input, shape index: {}]   ;;  %s203_s1 = inlined_call_operand.vmem [shape: f32[128,4], index: 1, kind: input, shape index: {}]   ;;  %s204_s2 = inlined_call_operand.<no memory space> [shape: f32[1,1], index: 2, kind: input, shape index: {}]   ;;  %s205_s3 = inlined_call_operand.hbm [shape: f32[2,4], index: 3, kind: output, shape index: {}]  }
   0x1   :  { %v32_v0 = vld [vmem:[%s203_s1 + $0x78] sm:$0xff]  ;;  %v31_v1 = vld [vmem:[%s203_s1 + $0x70] sm:$0xff]  ;;  %v30_v2 = vld [vmem:[%s203_s1 + $0x68] sm:$0xff] }
   0x2   :  { %35 = vmatpush.msra.mxu0 %v32_v0  ;;  %v29_v3 = vld [vmem:[%s203_s1 + $0x60] sm:$0xff] }
   0x4   :  { %36 = vmatpush.msra.mxu0 %v31_v1 }
   0x6   :  { %37 = vmatpush.msra.mxu0 %v30_v2 }
   0x7   :  { %9 = vsyncpa [#allocation4], 0  ;;  %v28_v4 = vld [vmem:[%s203_s1 + $0x58] sm:$0xff]  ;;  %v27_v5 = vld [vmem:[%s203_s1 + $0x50] sm:$0xff]  ;;  %v34_v17 = vstv %s204_s2  ;;  %s83_s2 = sshll.u32 %s205_s3, 4  ;;  %vm74_vm3 = vcmask 25600   ;;  %s84_s2 = int_to_ptr.hbm [resolvable:$true] %s83_s2 }
   0x8   :  { %38 = vmatpush.msra.mxu0 %v29_v3  ;;  %v26_v6 = vld [vmem:[%s203_s1 + $0x48] sm:$0xff]  ;;  %v25_v7 = vld [vmem:[%s203_s1 + $0x40] sm:$0xff]  ;;  %v24_v8 = vld [vmem:[%s203_s1 + $0x38] sm:$0xff] }
   0x9   :  { %v23_v9 = vld [vmem:[%s203_s1 + $0x30] sm:$0xff]  ;;  %v22_v10 = vld [vmem:[%s203_s1 + $0x28] sm:$0xff]  ;;  %v21_v11 = vld [vmem:[%s203_s1 + $0x20] sm:$0xff] }
   0xa   :  { %39 = vmatpush.msra.mxu0 %v28_v4  ;;  %v20_v12 = vld [vmem:[%s203_s1 + $0x18] sm:$0xff]  ;;  %v19_v13 = vld [vmem:[%s203_s1 + $0x10] sm:$0xff]  ;;  %v18_v14 = vld [vmem:[%s203_s1 + $0x8] sm:$0xff] }
   0xb   :  { %v17_v15 = vld [vmem:[%s203_s1] sm:$0xff] }
   0xc   :  { %40 = vmatpush.msra.mxu0 %v27_v5  ;;  %v16_v16 = vld [vmem:[%s202_s0] sm:$0x3]  ;;  %s124_s0 = smov [#allocation3]  }
   0xd   :  { %s81_s1 = sshll.u32 %s124_s0, 4  ;;  %s82_s1 = int_to_ptr.vmem [resolvable:$true] %s81_s1 }
   0xe   :  { %41 = vmatpush.msra.mxu0 %v26_v6 }
  0x10   :  { %42 = vmatpush.msra.mxu0 %v25_v7 }
  0x12   :  { %43 = vmatpush.msra.mxu0 %v24_v8 }
  0x14   :  { %44 = vmatpush.msra.mxu0 %v23_v9 }
  0x16   :  { %45 = vmatpush.msra.mxu0 %v22_v10 }
  0x18   :  { %46 = vmatpush.msra.mxu0 %v21_v11 }
  0x1a   :  { %47 = vmatpush.msra.mxu0 %v20_v12 }
  0x1c   :  { %48 = vmatpush.msra.mxu0 %v19_v13 }
  0x1e   :  { %49 = vmatpush.msra.mxu0 %v18_v14 }
  0x20   :  { %50 = vmatpush.msra.mxu0 %v17_v15 }
  0x21   :  { %51 = vmatmul.f32.vlgmr.msra.gmra.mxu0 %v16_v16 }
  0x9e   :  { %v52_v18 = vpop.f32.mrf.mxu0 }
  0x9f   :  { %v53_v19 = vadd.f32 %v52_v18, %v34_v17 }
  0xa1   :  { %v92_v20 = vmul.f32 -1.442695, %v53_v19 }
  0xa3   :  { %94 = vpow2.f32 %v92_v20 }
  0xa9   :  { %v95_v21 = vpop.eup %94 }
  0xaa   :  { %v58_v22 = vadd.f32 1.0, %v95_v21 }
  0xac   :  { %96 = vrcp.f32 %v58_v22  ;;  %v70_v26 = vand.u32 2147483648, %v58_v22  ;;  %v68_v28 = vand.u32 2147483647, %v58_v22  ;;  %vm64_vm1 = vweird.f32 %v58_v22 }
  0xae   :  { %v71_v30 = vor.u32 1.1754944e-38, %v70_v26  ;;  %vm69_vm4 = vcmp.eq.f32.partialorder %v68_v28, 8.507059e+37 }
  0xb2   :  { %v97_v23 = vpop.eup %96 }
  0xb3   :  { %v60_v24 = vmul.f32 %v97_v23, %v58_v22  ;;  %vm65_vm0 = vweird.f32 %v97_v23 }
  0xb4   :  { %vm66_vm2 = vmor %vm64_vm1, %vm65_vm0 }
  0xb5   :  { %v61_v25 = vsub.f32 1.0, %v60_v24 }
  0xb7   :  { %v62_v27 = vmul.f32 %v97_v23, %v61_v25 }
  0xb9   :  { %v63_v29 = vadd.f32 %v97_v23, %v62_v27 }
  0xbb   :  { %v67_v31 = vsel %vm66_vm2, %v97_v23, %v63_v29 }
  0xbc   :  { %v72_v32 = vsel %vm69_vm4, %v71_v30, %v67_v31 }
  0xbd   :  { %75 = vst.msk [vmem:[#allocation3] sm:$0x3] %vm74_vm3, %v72_v32 }
  0xbe   :  { %86 = dma.vmem_to_hbm [thread:$0]  %s82_s1, 32, %s84_s2, [#allocation4]  }
  0xbf   :  { %122 = dma.done.wait [#allocation4], 32  }
  0xc0   :  { %123 = vsyncadd [#allocation4], 4294967264 }
  0xc1   :  { %91 = vsyncpa [#allocation4], 1 }

</bundles_post_ra>
